<compile_context>
chip_gen: v7x
topology: tpu7x:2x2x1
jax: 0.10.0
libtpu: 0.0.40
codegen_flags: <defaults>
</compile_context>

<pallas_src>
import functools

import jax
import jax.numpy as jnp
import numpy as np
from jax.experimental import pallas as pl
from jax.experimental.pallas import tpu as pltpu


def _dropout_model_kernel(x_ref, frac_ref, w_ref, b_ref, o_ref):
    """One (batch element, HW-tile) step, all in native layout.

    x_ref:    (C, T)      channels x spatial slab of one batch element
    frac_ref: (1, T)      mean-over-samples of the binary dropout mask
    w_ref:    (C_out, C)  1x1-conv weight (resident across the grid)
    b_ref:    (C_out, 1)  bias (resident)
    o_ref:    (C_out, T)  output slab
    """
    # 1x1 conv of the *unmasked* input, hoisted out of the sample dimension:
    # W @ (x * m) == (W @ x) * m for a channel-broadcast mask.
    z = jnp.dot(w_ref[...], x_ref[...], preferred_element_type=jnp.float32)  # (C_out, T)
    b = b_ref[...]                                                           # (C_out, 1)

    on = jnp.maximum(z + b, 0.0)   # value where mask == 1
    off = jnp.maximum(b, 0.0)      # value where mask == 0 (tile constant)

    # Exact closed form of mean over the S dropout samples for {0,1} masks:
    #   mean_s relu(z*m_s + b) = off + frac*(on - off)
    frac = frac_ref[...]                                                     # (1, T)
    o_ref[...] = (off + frac * (on - off)).astype(o_ref.dtype)


def _choose_tile_hw(C, C_out, HW, budget_bytes=24 << 20):
    """Largest lane tile whose double-buffered f32 footprint fits the VMEM budget."""
    per_lane = 2 * 4 * (C + 1 + C_out)          # x + frac + out, double-buffered, f32
    max_t = max(128, ((budget_bytes // per_lane) // 128) * 128)
    if HW <= max_t:
        return HW                                # full spatial extent in one tile
    for t in range(max_t, 127, -128):            # prefer a tile that divides HW evenly
        if HW % t == 0:
            return t
    return max_t                                 # boundary tile handled by Pallas masking


def model_with_input_dropout(x, weight, bias, *, keep_prob, num_samples, key):
    """x: (B, C, H, W) f32; weight: (C_out, C); bias: (C_out,).

    Returns (out, mask_sbhw) with out: (B, C_out, H, W), mask_sbhw: (S, B, H*W).
    """
    B, C, H, W = x.shape
    C_out = weight.shape[0]
    HW = H * W
    S = num_samples

    # Dropout mask matching torch semantics: rand(S*B, 1, H, W) <= keep_prob,
    # boolean, NO inverted-dropout rescale.  Sample-major ordering matches
    # x.repeat(S, 1, 1, 1).  (jax.random cannot reproduce torch's RNG bits; only
    # statistical equivalence.)
    u = jax.random.uniform(key, (S * B, 1, H, W), dtype=jnp.float32)
    mask_sbhw = (u <= keep_prob).astype(jnp.float32).reshape(S, B, HW)

    # frac = mean over samples — the only mask-derived data the kernel reads
    # (S x smaller than streaming the full mask).  Fuses with mask gen under jit.
    frac = jnp.mean(mask_sbhw, axis=0).reshape(B, 1, HW)                  # (B, 1, HW)

    x3 = x.reshape(B, C, HW)             # native layout: no transpose, no copy
    bias2 = bias.reshape(C_out, 1)

    tile_hw = _choose_tile_hw(C, C_out, HW)
    grid = (B, pl.cdiv(HW, tile_hw))     # B leading => >=2 parallel steps when B >= 2

    out3 = pl.pallas_call(
        _dropout_model_kernel,
        out_shape=jax.ShapeDtypeStruct((B, C_out, HW), jnp.float32),
        grid=grid,
        in_specs=[
            pl.BlockSpec((pl.Squeezed(), C, tile_hw), lambda b, n: (b, 0, n)),      # x
            pl.BlockSpec((pl.Squeezed(), 1, tile_hw), lambda b, n: (b, 0, n)),      # frac
            pl.BlockSpec((C_out, C), lambda b, n: (0, 0)),                          # weight
            pl.BlockSpec((C_out, 1), lambda b, n: (0, 0)),                          # bias
        ],
        out_specs=pl.BlockSpec((pl.Squeezed(), C_out, tile_hw), lambda b, n: (b, 0, n)),
        compiler_params=pltpu.CompilerParams(
            dimension_semantics=("parallel", "parallel"),   # megacore-shardable
            vmem_limit_bytes=32 * 1024 * 1024,              # budget headroom, v5e..v7x safe
        ),
    )(x3, frac, weight, bias2)

    out = out3.reshape(B, C_out, H, W)
    return out, mask_sbhw


def _reference(x, weight, bias, mask_sbhw):
    """Pure-JAX reference with the ORIGINAL per-sample-loop semantics (no closed form)."""
    S, B, HW = mask_sbhw.shape
    _, C, H, W = x.shape
    x_flat = x.reshape(B, C, HW)
    masked = x_flat[None, :, :, :] * mask_sbhw[:, :, None, :]             # (S, B, C, HW)
    y = jnp.einsum("oc,sbch->sboh", weight, masked) + bias[None, None, :, None]
    y = jnp.maximum(y, 0.0)
    return jnp.mean(y, axis=0).reshape(B, weight.shape[0], H, W)


if __name__ == "__main__":
    key = jax.random.PRNGKey(0)
    k_x, k_w, k_b, k_mask = jax.random.split(key, 4)

    B, C, H, W = 2, 4, 16, 16
    C_out = 8
    keep_prob = 0.8
    num_samples = 4

    x = jax.random.normal(k_x, (B, C, H, W), dtype=jnp.float32)
    weight = jax.random.normal(k_w, (C_out, C), dtype=jnp.float32) * 0.1
    bias = jax.random.normal(k_b, (C_out,), dtype=jnp.float32) * 0.1

    fwd = jax.jit(functools.partial(model_with_input_dropout,
                                    keep_prob=keep_prob, num_samples=num_samples))
    out, mask_sbhw = fwd(x, weight, bias, key=k_mask)
    out = jax.block_until_ready(out)

    # Cross-check against the per-sample-loop reference using the identical mask.
    ref = _reference(x, weight, bias, mask_sbhw)
    np.testing.assert_allclose(np.asarray(out), np.asarray(ref), rtol=1e-5, atol=1e-5)

    assert out.shape == (B, C_out, H, W)
    print("KERNEL_OK")
</pallas_src>

<mosaic_0001>
module attributes {stable_mosaic.version = 11 : i64} {
  func.func @_dropout_model_kernel(%arg0: i32, %arg1: i32, %arg2: memref<1x4x256xf32, #tpu.memory_space<vmem>>, %arg3: memref<1x1x256xf32, #tpu.memory_space<vmem>>, %arg4: memref<8x4xf32, #tpu.memory_space<vmem>>, %arg5: memref<8x1xf32, #tpu.memory_space<vmem>>, %arg6: memref<1x8x256xf32, #tpu.memory_space<vmem>>) attributes {dimension_semantics = [#tpu.dimension_semantics<parallel>, #tpu.dimension_semantics<parallel>], iteration_bounds = array<i64: 2, 1>, scalar_prefetch = 0 : i64, scratch_operands = 0 : i64, tpu.core_type = #tpu.core_type<tc>, window_params = [{transform_indices = @transform_0, window_bounds = array<i64: 1, 4, 256>}, {transform_indices = @transform_1, window_bounds = array<i64: 1, 1, 256>}, {pipeline_mode = #tpu.pipeline_mode<synchronous>, transform_indices = @transform_2, window_bounds = array<i64: 8, 4>}, {pipeline_mode = #tpu.pipeline_mode<synchronous>, transform_indices = @transform_3, window_bounds = array<i64: 8, 1>}, {transform_indices = @transform_4, window_bounds = array<i64: 1, 8, 256>}]} {
    %c0 = arith.constant 0 : index
    %c0_0 = arith.constant 0 : index
    %0 = vector.load %arg4[%c0, %c0_0] : memref<8x4xf32, #tpu.memory_space<vmem>>, vector<8x4xf32>
    %c0_1 = arith.constant 0 : index
    %c0_2 = arith.constant 0 : index
    %c0_3 = arith.constant 0 : index
    %1 = vector.load %arg2[%c0_1, %c0_2, %c0_3] : memref<1x4x256xf32, #tpu.memory_space<vmem>>, vector<1x4x256xf32>
    %2 = vector.shape_cast %1 : vector<1x4x256xf32> to vector<4x256xf32>
    %cst = arith.constant dense<0.000000e+00> : vector<8x256xf32>
    %3 = tpu.matmul %0, %2, %cst {dimension_numbers = #tpu.dot_dimension_numbers<[1], [0], [0], [1], [0, 0, 1, 1], [], []>} : vector<8x4xf32>, vector<4x256xf32>, vector<8x256xf32> -> vector<8x256xf32>
    %c0_4 = arith.constant 0 : index
    %c0_5 = arith.constant 0 : index
    %4 = vector.load %arg5[%c0_4, %c0_5] : memref<8x1xf32, #tpu.memory_space<vmem>>, vector<8x1xf32>
    %5 = vector.broadcast %4 : vector<8x1xf32> to vector<8x256xf32>
    %6 = arith.addf %3, %5 : vector<8x256xf32>
    %cst_6 = arith.constant 0.000000e+00 : f32
    %7 = vector.broadcast %cst_6 : f32 to vector<8x256xf32>
    %8 = arith.maximumf %6, %7 : vector<8x256xf32>
    %cst_7 = arith.constant 0.000000e+00 : f32
    %9 = vector.broadcast %cst_7 : f32 to vector<8x1xf32>
    %10 = arith.maximumf %4, %9 : vector<8x1xf32>
    %c0_8 = arith.constant 0 : index
    %c0_9 = arith.constant 0 : index
    %c0_10 = arith.constant 0 : index
    %11 = vector.load %arg3[%c0_8, %c0_9, %c0_10] : memref<1x1x256xf32, #tpu.memory_space<vmem>>, vector<1x1x256xf32>
    %12 = vector.shape_cast %11 : vector<1x1x256xf32> to vector<1x256xf32>
    %13 = vector.broadcast %10 : vector<8x1xf32> to vector<8x256xf32>
    %14 = arith.subf %8, %13 : vector<8x256xf32>
    %15 = vector.broadcast %12 : vector<1x256xf32> to vector<8x256xf32>
    %16 = arith.mulf %15, %14 : vector<8x256xf32>
    %17 = vector.broadcast %10 : vector<8x1xf32> to vector<8x256xf32>
    %18 = arith.addf %17, %16 : vector<8x256xf32>
    %c0_11 = arith.constant 0 : index
    %c0_12 = arith.constant 0 : index
    %c0_13 = arith.constant 0 : index
    %19 = vector.load %arg6[%c0_11, %c0_12, %c0_13] : memref<1x8x256xf32, #tpu.memory_space<vmem>>, vector<1x8x256xf32>
    %20 = vector.shape_cast %19 : vector<1x8x256xf32> to vector<8x256xf32>
    %21 = vector.shape_cast %18 : vector<8x256xf32> to vector<1x8x256xf32>
    tpu.vector_store %arg6[%c0_11, %c0_12, %c0_13], %21 {strides = array<i32>} : memref<1x8x256xf32, #tpu.memory_space<vmem>>, vector<1x8x256xf32>,
    return
  }
  func.func @transform_0(%arg0: i32, %arg1: i32) -> (i32, i32, i32) {
    %c0_i32 = arith.constant 0 : i32
    %c0_i32_0 = arith.constant 0 : i32
    return %arg0, %c0_i32, %arg1 : i32, i32, i32
  }
  func.func @transform_1(%arg0: i32, %arg1: i32) -> (i32, i32, i32) {
    %c0_i32 = arith.constant 0 : i32
    %c0_i32_0 = arith.constant 0 : i32
    return %arg0, %c0_i32, %arg1 : i32, i32, i32
  }
  func.func @transform_2(%arg0: i32, %arg1: i32) -> (i32, i32) {
    %c0_i32 = arith.constant 0 : i32
    %c0_i32_0 = arith.constant 0 : i32
    %c0_i32_1 = arith.constant 0 : i32
    return %c0_i32, %c0_i32_0 : i32, i32
  }
  func.func @transform_3(%arg0: i32, %arg1: i32) -> (i32, i32) {
    %c0_i32 = arith.constant 0 : i32
    %c0_i32_0 = arith.constant 0 : i32
    %c0_i32_1 = arith.constant 0 : i32
    return %c0_i32, %c0_i32_0 : i32, i32
  }
  func.func @transform_4(%arg0: i32, %arg1: i32) -> (i32, i32, i32) {
    %c0_i32 = arith.constant 0 : i32
    %c0_i32_0 = arith.constant 0 : i32
    return %arg0, %c0_i32, %arg1 : i32, i32, i32
  }
}

</mosaic_0001>

<bundles_post_ra>
// kernel: model_with_input_dropout.1
= control target key start
LH: loop header
LB: loop body
LE: loop exit
PB: predicated region body
PF: predicated region fallthrough
CT: control target
= control target key end

     0   :  { %s586_s15 = smov 0   ;;  %s588_s16 = smov 0   ;;  %s633_s0 = inlined_call_operand.vmem [shape: f32[2,4,256], index: 0, kind: input, shape index: {}]   ;;  %s634_s1 = inlined_call_operand.vmem [shape: f32[2,1,256], index: 1, kind: input, shape index: {}]   ;;  %s635_s2 = inlined_call_operand.vmem [shape: f32[8,4], index: 2, kind: input, shape index: {}]   ;;  %s636_s3 = inlined_call_operand.vmem [shape: f32[8,1], index: 3, kind: input, shape index: {}]   ;;  %s637_s4 = inlined_call_operand.vmem [shape: f32[2,8,256], index: 4, kind: output, shape index: {}]  }
   0x1   :  { %s590_s17 = smov 0  }
   0x2 LB: > { %s26_s18 = sadd.s32 1, %s553_s16  ;;  %p494_p0 = scmp.ge.s32.totalorder %s557_s17, 1  ;;  %s557_s17 = sphi %s590_s17, %s14_s17   ;;  %s553_s16 = sphi %s588_s16, %s639_s16   ;;  %s549_s15 = sphi %s586_s15, %s638_s15  }
   0x3   : > { %p28_p1 = scmp.ge.s32.totalorder %s26_s18, 2  ;;  %p199_p2 = scmp.lt.s32.totalorder %s557_s17, 3 }
   0x5   : > { %s641_s18 = smov (%p28_p1, %s26_s18), 0  ;;  %p200_p3 = pnand %p494_p0, %p199_p2 }
   0x6   : > { %p242_p4 = scmp.lt.s32.totalorder (!%p200_p3), %s549_s15, 1  ;;  %v559_v0 = vmov (!%p200_p3), 0.0   ;;  %v560_v1 = vmov (!%p200_p3), 0   ;;  %v272_v2 = vld [vmem:[%s636_s3] sm:$0xff] (!%p200_p3)  ;;  %vm284_vm0 = vcmask (!%p200_p3), 1043456   ;;  %vm280_vm1 = vcmask (!%p200_p3), 31744  }
   0x7   : > { %203 = sbr.rel (%p200_p3) target bundleno = 246 (0xf6), region = 36  ;;  %353 = vmatprep.mubr.f32.mxu0 (!%p200_p3), %v559_v0  ;;  %533 = vset.pattern.permute.xlu0 (!%p200_p3), %v560_v1  ;;  %v362_v3 = vmax.f32 (!%p200_p3), %v272_v2, 0.0  ;;  %v270_v6 = vld [vmem:[%s635_s2] sm:$0xff] (!%p200_p3)  ;;  %v372_v7 = vlaneseq (!%p200_p3) }
   0x8   : > { %275 = vperm.xlu0 (!%p200_p3), %533, %v272_v2  }
   0x9   : > { %v373_v8 = vshrl.u32 (!%p200_p3), %v372_v7, 7 }
   0xb   : > { %v374_v10 = vsub.s32 (!%p200_p3), 0, %v373_v8  ;;  %v378_v13 = vsub.s32 (!%p200_p3), 1, %v373_v8 }
   0xc   : > { %366 = vperm.xlu0 (!%p200_p3), %533, %v362_v3  }
   0xe   : > { %s643_s15 = smov (!%p242_p4, %s549_s15), 1 }
   0xf   : > { %s505_s21 = sshll.u32 %s643_s15, 3  ;;  %s497_s27 = sshll.u32 %s643_s15, 1 }
  0x10   : > { %s249_s24 = scalar_lea.vmem %s633_s0, %s505_s21  ;;  %s258_s30 = scalar_lea.vmem %s634_s1, %s497_s27 }
  0x11   : > { %v271_v4 = vld [vmem:[%s249_s24] sm:$0xff]  ;;  %s506_s5 = sshll.u32 %s643_s15, 4 }
  0x12   : > { %v279_v5 = vcombine.high %v271_v4, %v271_v4  ;;  %v363_v12 = vld [vmem:[%s258_s30] sm:$0x3]  ;;  %s268_s8 = scalar_lea.vmem %s637_s4, %s506_s5 }
  0x13   : > { %v375_v18 = vrot.slane %v363_v12, %v374_v10  ;;  %v379_v21 = vrot.slane %v363_v12, %v378_v13 }
  0x14   : > { %500 = vmatprep.subr.msk.mxu0 %vm284_vm0, %v279_v5 }
  0x15   : > { %501 = vmatpush1.msk.msra.mxu0 %vm284_vm0, %v271_v4 }
  0x16   : > { %502 = vmatmul.mubr.msk.f32.vlgmr.msra.gmra.mrb[0].mxu0 %vm280_vm1, %v270_v6 }
  0x87   : > { %v276_v9 = vpop.permute.xlu0 %275 }
  0x8b   : > { %v367_v19 = vpop.permute.xlu0 %366 }
  0xe9   : > { %v355_v11 = vpop.f32.mrb[0].mxu0 }
  0xea   : > { %v356_v14 = vadd.f32 %v355_v11, %v276_v9  ;;  %v357_v15 = vpop.f32.mrb[1].mxu0 }
  0xeb   : > { %v358_v16 = vadd.f32 %v357_v15, %v276_v9 }
  0xec   : > { %v360_v17 = vmax.f32 %v356_v14, 0.0 }
  0xed   : > { %v361_v20 = vmax.f32 %v358_v16, 0.0 }
  0xee   : > { %v369_v22 = vsub.f32 %v360_v17, %v367_v19 }
  0xef   : > { %v370_v23 = vsub.f32 %v361_v20, %v367_v19 }
  0xf0   : > { %v382_v24 = vmul.f32 %v375_v18, %v369_v22 }
  0xf1   : > { %v383_v25 = vmul.f32 %v379_v21, %v370_v23 }
  0xf2   : > { %v384_v26 = vadd.f32 %v382_v24, %v367_v19 }
  0xf3   : > { %v385_v27 = vadd.f32 %v383_v25, %v367_v19 }
  0xf4   : > { %386 = vst [vmem:[%s268_s8] sm:$0xff] %v384_v26 }
  0xf5   : > { %387 = vst [vmem:[%s268_s8 + $0x8] sm:$0xff] %v385_v27 }
  0xf6 PF: > { %s14_s17 = sadd.s32 1, %s557_s17   ;;  %s638_s15 = smov %s553_s16 }
  0xf7   : > { %p11_p5 = scmp.ge.s32.totalorder %s14_s17, 4   ;;  %s639_s16 = smov %s641_s18 }
  0xf9   :  { %13 = sbr.rel (!%p11_p5) target bundleno = 2 (0x2), region = 69 }

</bundles_post_ra>
